<compile_context>
chip_gen: v5e
topology: v5e:2x2
jax: 0.10.0
libtpu: 0.0.40
codegen_flags: <defaults>
</compile_context>

<pallas_src>
import jax
import jax.numpy as jnp
from jax.experimental import pallas as pl
from jax.experimental.pallas import tpu as pltpu

INPUT_SIZE = 30      # Wisconsin breast-cancer feature count (x_train_trans.shape[1])
NUM_CLASSES = 2      # nn.Linear(INPUT_SIZE, 2)

# TSKONE activation coefficients.
# TODO(synk): exact tsk.TSKONE transfer-curve coefficients are not available here;
# modeled deterministically as two context-dependent quadratics over the MinMaxScaler
# (30, 45) input range (one curve per material/temperature context).
_A1, _B1, _C1 = -0.0017, 0.1396, -1.83   # context code 1
_A2, _B2, _C2 = -0.0012, 0.1002, -1.10   # context code 2


def _round_up(n, m):
    return ((n + m - 1) // m) * m


def _seqnet_ctext_kernel(ctx_ref, x_ref, wt_ref, b_ref, o_ref):
    """Fused TSKONE -> linear -> abs -> log_softmax for one batch tile.

    ctx_ref: (1,) int32 in SMEM (scalar prefetch)  -- ctext flag (0 / 1)
    x_ref  : (TB, F)  scaled inputs in [30, 45]
    wt_ref : (F, C)   transposed linear weight (VMEM-resident across the grid)
    b_ref  : (1, C)   bias                      (VMEM-resident across the grid)
    o_ref  : (TB, C)  log-probabilities
    """
    x = x_ref[...]

    # CTEXTgen + TSKONE: regenerate the per-feature context in-kernel (no HBM stream).
    # TODO(synk): tsk.CTEXTgen source unavailable; modeled as alternating 1/2 per-feature
    # context codes when ctext is True, else all-ones.
    use_ctx = ctx_ref[0] > 0
    parity = jax.lax.broadcasted_iota(jnp.int32, x.shape, dimension=1) % 2
    is_ctx2 = jnp.logical_and(use_ctx, parity == 1)

    a = jnp.where(is_ctx2, _A2, _A1)
    b = jnp.where(is_ctx2, _B2, _B1)
    c = jnp.where(is_ctx2, _C2, _C1)
    y = (a * x + b) * x + c                      # Horner form, pure VPU

    # F.linear + abs (MXU + VPU)
    logits = jnp.dot(y, wt_ref[...], preferred_element_type=jnp.float32) + b_ref[...]
    logits = jnp.abs(logits)

    # 2-class log_softmax without cross-lane reductions:
    #   lse = l1 + softplus(l0 - l1) = max(l0, l1) + log1p(exp(-|l0 - l1|))
    d = logits[:, 0:1] - logits[:, 1:2]
    softplus_d = jnp.maximum(d, 0.0) + jnp.log1p(jnp.exp(-jnp.abs(d)))
    lse = logits[:, 1:2] + softplus_d
    o_ref[...] = logits - lse


def seqnet_ctext_forward(x, ctext_flag, w, b, *, tb_max=4096):
    """Wrapper: reshape / weight transpose in plain JAX, hot path in one Pallas kernel."""
    x2 = x.reshape(-1, INPUT_SIZE).astype(jnp.float32)          # x.view(-1, INPUT_SIZE)
    batch = x2.shape[0]

    # Batch tile: multiple of 8 (sublane), capped so double-buffered VMEM stays small
    # even on v7x (64 MiB physical / 32 MiB default scoped VMEM).
    tb = tb_max if batch >= tb_max else _round_up(max(batch, 1), 8)
    padded = _round_up(batch, tb)
    if padded != batch:
        x2 = jnp.pad(x2, ((0, padded - batch), (0, 0)))

    wt = jnp.asarray(w, jnp.float32).T                          # (F, C)
    b2 = jnp.asarray(b, jnp.float32).reshape(1, NUM_CLASSES)    # (1, C)
    ctx = jnp.asarray(ctext_flag, jnp.int32).reshape(1)         # scalar-prefetch flag

    grid = (padded // tb,)

    out = pl.pallas_call(
        _seqnet_ctext_kernel,
        out_shape=jax.ShapeDtypeStruct((padded, NUM_CLASSES), jnp.float32),
        grid_spec=pltpu.PrefetchScalarGridSpec(
            num_scalar_prefetch=1,
            grid=grid,
            in_specs=[
                pl.BlockSpec((tb, INPUT_SIZE), lambda i, ctx_ref: (i, 0)),
                pl.BlockSpec((INPUT_SIZE, NUM_CLASSES), lambda i, ctx_ref: (0, 0)),
                pl.BlockSpec((1, NUM_CLASSES), lambda i, ctx_ref: (0, 0)),
            ],
            out_specs=pl.BlockSpec((tb, NUM_CLASSES), lambda i, ctx_ref: (i, 0)),
        ),
        compiler_params=pltpu.CompilerParams(
            dimension_semantics=("parallel",),
        ),
    )(ctx, x2, wt, b2)

    return out[:batch] if padded != batch else out


def _reference_forward(x, ctext_flag, w, b):
    """Pure-JAX reference of the same (placeholder-coefficient) forward pass."""
    x2 = x.reshape(-1, INPUT_SIZE).astype(jnp.float32)
    parity = (jnp.arange(INPUT_SIZE) % 2) == 1
    is_ctx2 = jnp.logical_and(bool(ctext_flag), parity)[None, :]
    a = jnp.where(is_ctx2, _A2, _A1)
    bq = jnp.where(is_ctx2, _B2, _B1)
    cq = jnp.where(is_ctx2, _C2, _C1)
    y = (a * x2 + bq) * x2 + cq
    logits = jnp.abs(y @ jnp.asarray(w, jnp.float32).T + jnp.asarray(b, jnp.float32))
    return jax.nn.log_softmax(logits, axis=1)


if __name__ == "__main__":
    key = jax.random.PRNGKey(0)
    kx, kw, kb = jax.random.split(key, 3)

    BATCH = 8
    # Inputs already MinMax-scaled into [30, 45] (as scaler.fit_transform would produce).
    x = jax.random.uniform(kx, (BATCH, INPUT_SIZE), jnp.float32, minval=30.0, maxval=45.0)

    # Deterministic nn.Linear(INPUT_SIZE, 2)-style init: U(-1/sqrt(F), 1/sqrt(F)).
    bound = 1.0 / (INPUT_SIZE ** 0.5)
    w = jax.random.uniform(kw, (NUM_CLASSES, INPUT_SIZE), jnp.float32, -bound, bound)
    b = jax.random.uniform(kb, (NUM_CLASSES,), jnp.float32, -bound, bound)

    ctext = True  # as in the original script

    out = seqnet_ctext_forward(x, ctext, w, b)
    out = jax.block_until_ready(out)

    # Sanity: rows of log_softmax output must exponentiate-sum to 1, and match the reference.
    row_sums = jnp.exp(out).sum(axis=1)
    ref = _reference_forward(x, ctext, w, b)
    assert out.shape == (BATCH, NUM_CLASSES)
    assert bool(jnp.all(jnp.abs(row_sums - 1.0) < 1e-5))
    assert bool(jnp.all(jnp.abs(out - ref) < 1e-4))

    print("KERNEL_OK")
</pallas_src>

<mosaic_0001>
module attributes {stable_mosaic.version = 11 : i64} {
  func.func @_seqnet_ctext_kernel(%arg0: i32, %arg1: memref<1xi32, #tpu.memory_space<smem>>, %arg2: memref<8x30xf32, #tpu.memory_space<vmem>>, %arg3: memref<30x2xf32, #tpu.memory_space<vmem>>, %arg4: memref<1x2xf32, #tpu.memory_space<vmem>>, %arg5: memref<8x2xf32, #tpu.memory_space<vmem>>) attributes {dimension_semantics = [#tpu.dimension_semantics<parallel>], iteration_bounds = array<i64: 1>, scalar_prefetch = 1 : i64, scratch_operands = 0 : i64, tpu.core_type = #tpu.core_type<tc>, window_params = [{transform_indices = @transform_0, window_bounds = array<i64: 8, 30>}, {pipeline_mode = #tpu.pipeline_mode<synchronous>, transform_indices = @transform_1, window_bounds = array<i64: 30, 2>}, {pipeline_mode = #tpu.pipeline_mode<synchronous>, transform_indices = @transform_2, window_bounds = array<i64: 1, 2>}, {transform_indices = @transform_3, window_bounds = array<i64: 8, 2>}]} {
    %c0 = arith.constant 0 : index
    %c0_0 = arith.constant 0 : index
    %0 = vector.load %arg2[%c0, %c0_0] : memref<8x30xf32, #tpu.memory_space<vmem>>, vector<8x30xf32>
    %c0_1 = arith.constant 0 : index
    %1 = memref.load %arg1[%c0_1] : memref<1xi32, #tpu.memory_space<smem>>
    %c0_i32 = arith.constant 0 : i32
    %2 = arith.cmpi sgt, %1, %c0_i32 : i32
    %3 = tpu.iota {dimensions = array<i32: 1>} : vector<8x30xi32>
    %c2_i32 = arith.constant 2 : i32
    %c0_i32_2 = arith.constant 0 : i32
    %4 = arith.cmpi eq, %c2_i32, %c0_i32_2 : i32
    %c1_i32 = arith.constant 1 : i32
    %5 = arith.select %4, %c1_i32, %c2_i32 : i32
    %6 = vector.broadcast %5 : i32 to vector<8x30xi32>
    %7 = arith.remsi %3, %6 : vector<8x30xi32>
    %c0_i32_3 = arith.constant 0 : i32
    %8 = vector.broadcast %c0_i32_3 : i32 to vector<8x30xi32>
    %9 = arith.cmpi ne, %7, %8 : vector<8x30xi32>
    %c0_i32_4 = arith.constant 0 : i32
    %10 = vector.broadcast %c0_i32_4 : i32 to vector<8x30xi32>
    %11 = arith.cmpi slt, %7, %10 : vector<8x30xi32>
    %c0_i32_5 = arith.constant 0 : i32
    %12 = arith.cmpi slt, %5, %c0_i32_5 : i32
    %13 = vector.broadcast %12 : i1 to vector<8x30xi1>
    %14 = vector.broadcast %13 : vector<8x30xi1> to vector<8x30xi1>
    %15 = arith.xori %11, %14 : vector<8x30xi1>
    %16 = arith.andi %15, %9 : vector<8x30xi1>
    %17 = vector.broadcast %5 : i32 to vector<8x30xi32>
    %18 = arith.addi %7, %17 : vector<8x30xi32>
    %19 = arith.select %16, %18, %7 : vector<8x30xi1>, vector<8x30xi32>
    %c1_i32_6 = arith.constant 1 : i32
    %20 = vector.broadcast %c1_i32_6 : i32 to vector<8x30xi32>
    %21 = arith.cmpi eq, %19, %20 : vector<8x30xi32>
    %22 = vector.broadcast %2 : i1 to vector<8x30xi1>
    %23 = arith.andi %22, %21 : vector<8x30xi1>
    %cst = arith.constant -1.200000e-03 : f32
    %cst_7 = arith.constant -1.700000e-03 : f32
    %24 = vector.broadcast %cst : f32 to vector<8x30xf32>
    %25 = vector.broadcast %cst_7 : f32 to vector<8x30xf32>
    %26 = arith.select %23, %24, %25 : vector<8x30xi1>, vector<8x30xf32>
    %cst_8 = arith.constant 1.002000e-01 : f32
    %cst_9 = arith.constant 1.396000e-01 : f32
    %27 = vector.broadcast %cst_8 : f32 to vector<8x30xf32>
    %28 = vector.broadcast %cst_9 : f32 to vector<8x30xf32>
    %29 = arith.select %23, %27, %28 : vector<8x30xi1>, vector<8x30xf32>
    %cst_10 = arith.constant -1.100000e+00 : f32
    %cst_11 = arith.constant -1.830000e+00 : f32
    %30 = vector.broadcast %cst_10 : f32 to vector<8x30xf32>
    %31 = vector.broadcast %cst_11 : f32 to vector<8x30xf32>
    %32 = arith.select %23, %30, %31 : vector<8x30xi1>, vector<8x30xf32>
    %33 = arith.mulf %26, %0 : vector<8x30xf32>
    %34 = arith.addf %33, %29 : vector<8x30xf32>
    %35 = arith.mulf %34, %0 : vector<8x30xf32>
    %36 = arith.addf %35, %32 : vector<8x30xf32>
    %c0_12 = arith.constant 0 : index
    %c0_13 = arith.constant 0 : index
    %37 = vector.load %arg3[%c0_12, %c0_13] : memref<30x2xf32, #tpu.memory_space<vmem>>, vector<30x2xf32>
    %cst_14 = arith.constant dense<0.000000e+00> : vector<8x2xf32>
    %38 = tpu.matmul %36, %37, %cst_14 {dimension_numbers = #tpu.dot_dimension_numbers<[1], [0], [0], [1], [0, 0, 1, 1], [], []>} : vector<8x30xf32>, vector<30x2xf32>, vector<8x2xf32> -> vector<8x2xf32>
    %c0_15 = arith.constant 0 : index
    %c0_16 = arith.constant 0 : index
    %39 = vector.load %arg4[%c0_15, %c0_16] : memref<1x2xf32, #tpu.memory_space<vmem>>, vector<1x2xf32>
    %40 = vector.broadcast %39 : vector<1x2xf32> to vector<8x2xf32>
    %41 = arith.addf %38, %40 : vector<8x2xf32>
    %42 = math.absf %41 : vector<8x2xf32>
    %43 = vector.extract_strided_slice %42 {offsets = [0, 0], sizes = [8, 1], strides = [1, 1]} : vector<8x2xf32> to vector<8x1xf32>
    %44 = vector.extract_strided_slice %42 {offsets = [0, 1], sizes = [8, 1], strides = [1, 1]} : vector<8x2xf32> to vector<8x1xf32>
    %45 = arith.subf %43, %44 : vector<8x1xf32>
    %cst_17 = arith.constant 0.000000e+00 : f32
    %46 = vector.broadcast %cst_17 : f32 to vector<8x1xf32>
    %47 = arith.maximumf %45, %46 : vector<8x1xf32>
    %48 = math.absf %45 : vector<8x1xf32>
    %cst_18 = arith.constant 0.000000e+00 : f32
    %49 = vector.broadcast %cst_18 : f32 to vector<8x1xf32>
    %50 = arith.subf %49, %48 : vector<8x1xf32>
    %51 = math.exp %50 : vector<8x1xf32>
    %52 = math.log1p %51 : vector<8x1xf32>
    %53 = arith.addf %47, %52 : vector<8x1xf32>
    %54 = vector.extract_strided_slice %42 {offsets = [0, 1], sizes = [8, 1], strides = [1, 1]} : vector<8x2xf32> to vector<8x1xf32>
    %55 = arith.addf %54, %53 : vector<8x1xf32>
    %56 = vector.broadcast %55 : vector<8x1xf32> to vector<8x2xf32>
    %57 = arith.subf %42, %56 : vector<8x2xf32>
    %c0_19 = arith.constant 0 : index
    %c0_20 = arith.constant 0 : index
    %58 = vector.load %arg5[%c0_19, %c0_20] : memref<8x2xf32, #tpu.memory_space<vmem>>, vector<8x2xf32>
    tpu.vector_store %arg5[%c0_19, %c0_20], %57 {strides = array<i32>} : memref<8x2xf32, #tpu.memory_space<vmem>>, vector<8x2xf32>,
    return
  }
  func.func @transform_0(%arg0: i32, %arg1: memref<1xi32, #tpu.memory_space<smem>>) -> (i32, i32) {
    %c0_i32 = arith.constant 0 : i32
    %c0_i32_0 = arith.constant 0 : i32
    return %arg0, %c0_i32 : i32, i32
  }
  func.func @transform_1(%arg0: i32, %arg1: memref<1xi32, #tpu.memory_space<smem>>) -> (i32, i32) {
    %c0_i32 = arith.constant 0 : i32
    %c0_i32_0 = arith.constant 0 : i32
    %c0_i32_1 = arith.constant 0 : i32
    return %c0_i32, %c0_i32_0 : i32, i32
  }
  func.func @transform_2(%arg0: i32, %arg1: memref<1xi32, #tpu.memory_space<smem>>) -> (i32, i32) {
    %c0_i32 = arith.constant 0 : i32
    %c0_i32_0 = arith.constant 0 : i32
    %c0_i32_1 = arith.constant 0 : i32
    return %c0_i32, %c0_i32_0 : i32, i32
  }
  func.func @transform_3(%arg0: i32, %arg1: memref<1xi32, #tpu.memory_space<smem>>) -> (i32, i32) {
    %c0_i32 = arith.constant 0 : i32
    %c0_i32_0 = arith.constant 0 : i32
    return %arg0, %c0_i32 : i32, i32
  }
}

</mosaic_0001>

<bundles_post_ra>
// kernel: tpu_custom_call.1
= control target key start
LH: loop header
LB: loop body
LE: loop exit
PB: predicated region body
PF: predicated region fallthrough
CT: control target
= control target key end

     0   :  { %vm57_vm0 = vcmask 1045504   ;;  %v19_v0 = vlaneseq  ;;  %v134_v9 = vmov -0.0017   ;;  %v135_v11 = vmov 0.1396   ;;  %s189_s2 = inlined_call_operand.vmem [shape: f32[30,2], index: 2, kind: input, shape index: {}]   ;;  %s190_s0 = inlined_call_operand.<no memory space> [shape: s32[1], index: 0, kind: input, shape index: {}]   ;;  %s191_s3 = inlined_call_operand.vmem [shape: f32[1,2], index: 3, kind: input, shape index: {}]   ;;  %s192_s1 = inlined_call_operand.vmem [shape: f32[8,30], index: 1, kind: input, shape index: {}]   ;;  %s193_s4 = inlined_call_operand.vmem [shape: f32[8,2], index: 4, kind: output, shape index: {}]  }
   0x1   :  { %v48_v1 = vld [vmem:[%s189_s2 + $0x18] sm:$0x3f]  ;;  %v47_v2 = vld [vmem:[%s189_s2 + $0x10] sm:$0xff]  ;;  %p18_p0 = scmp.gt.s32.totalorder %s190_s0, 0  ;;  %v46_v4 = vld [vmem:[%s189_s2 + $0x8] sm:$0xff]  ;;  %vm53_vm4 = vcmask 244736  }
   0x2   :  { %119 = vmatpush.msk.msra.mxu0 %vm57_vm0, %v48_v1  ;;  %v20_v3 = vand.u32 127, %v19_v0  ;;  %v45_v6 = vld [vmem:[%s189_s2] sm:$0xff]  ;;  %v136_v15 = vmov -1.83   ;;  %v139_v39 = vmov 1   ;;  %vm113_vm6 = vcmask 15360  }
   0x3   :  { %s34_s23 = scalar_select %p18_p0, 1, 0  ;;  %v16_v8 = vld [vmem:[%s192_s1] sm:$0xff]  ;;  %127 = vset.pattern.permute.xlu1 %v139_v39  ;;  %128 = vset.pattern.permute.xlu0 %v139_v39 }
   0x4   :  { %74 = vmatpush.msra.mxu0 %v47_v2  ;;  %v25_v5 = vand.u32 1, %v20_v3  ;;  %v129_v19 = vld [vmem:[%s191_s3] ss:$0 sm:$0xff]  ;;  %s137_s1 = smov 127   ;;  %s138_s3 = smov 1  }
   0x5   :  { %v35_v7 = vstv %s34_s23 }
   0x6   :  { %75 = vmatpush.msra.mxu0 %v46_v4  ;;  %vm33_vm1 = vcmp.eq.s32.totalorder %v25_v5, 1  ;;  %vm36_vm2 = vcmp.eq.s32.totalorder %v35_v7, 1 }
   0x7   :  { %vm37_vm3 = vmand %vm36_vm2, %vm33_vm1 }
   0x8   :  { %76 = vmatpush.msra.mxu0 %v45_v6  ;;  %v38_v10 = vsel %vm37_vm3, -0.0012, %v134_v9  ;;  %v39_v12 = vsel %vm37_vm3, 0.1002, %v135_v11  ;;  %v40_v16 = vsel %vm37_vm3, -1.1, %v136_v15 }
   0x9   :  { %v41_v13 = vmul.f32 %v38_v10, %v16_v8 }
   0xb   :  { %v42_v14 = vadd.f32 %v41_v13, %v39_v12 }
   0xd   :  { %v43_v17 = vmul.f32 %v42_v14, %v16_v8 }
   0xf   :  { %v44_v18 = vadd.f32 %v43_v17, %v40_v16 }
  0x11   :  { %120 = vmatmul.msk.f32.vlgmr.msra.gmra.mxu0 %vm53_vm4, %v44_v18 }
  0x8e   :  { %v78_v20 = vpop.f32.mrf.mxu0 }
  0x8f   :  { %v79_v21 = vadd.f32 %v129_v19, %v78_v20 }
  0x91   :  { %v81_v22 = vand.u32 2147483647, %v79_v21 }
  0x93   :  { %83 = vrot.lane.b32.xlu0 %v81_v22, %s137_s1 }
 0x105   :  { %v84_v23 = vpop.permute.xlu0 %83 }
 0x106   :  { %v86_v24 = vsub.f32 %v81_v22, %v84_v23 }
 0x108   :  { %v88_v25 = vand.u32 2147483647, %v86_v24  ;;  %v87_v36 = vmax.f32 %v86_v24, 0.0 }
 0x10a   :  { %v89_v26 = vsub.f32 0.0, %v88_v25 }
 0x10c   :  { %v90_v27 = vmul.f32 1.442695, %v89_v26 }
 0x10e   :  { %130 = vpow2.f32 %v90_v27 }
 0x114   :  { %v131_v28 = vpop.eup %130 }
 0x115   :  { %v92_v29 = vadd.f32 1.0, %v131_v28  ;;  %v95_v30 = vmul.f32 -0.5, %v131_v28  ;;  %v98_v32 = vand.u32 2147483647, %v131_v28 }
 0x117   :  { %132 = vlog2.f32 %v92_v29  ;;  %v96_v31 = vadd.f32 1.0, %v95_v30  ;;  %vm99_vm5 = vcmp.lt.f32.partialorder %v98_v32, 0.0004427343 }
 0x119   :  { %v97_v35 = vmul.f32 %v131_v28, %v96_v31 }
 0x11d   :  { %v133_v33 = vpop.eup %132 }
 0x11e   :  { %v94_v34 = vmul.f32 0.6931472, %v133_v33 }
 0x120   :  { %v100_v37 = vsel %vm99_vm5, %v97_v35, %v94_v34 }
 0x121   :  { %v101_v38 = vadd.f32 %v100_v37, %v87_v36 }
 0x123   :  { %103 = vrot.lane.b32.xlu0 %v101_v38, %s138_s3 }
 0x195   :  { %v104_v40 = vpop.permute.xlu0 %103 }
 0x196   :  { %v106_v41 = vadd.f32 %v104_v40, %v81_v22 }
 0x198   :  { %109 = vperm.xlu1 %127, %v106_v41  }
 0x20a   :  { %v110_v42 = vpop.permute.xlu1 %109 }
 0x20b   :  { %v112_v43 = vsub.f32 %v81_v22, %v110_v42 }
 0x20d   :  { %114 = vst.msk [vmem:[%s193_s4] sm:$0xff] %vm113_vm6, %v112_v43 }

</bundles_post_ra>
